<compile_context>
chip_gen: v6e
topology: v6e:2x2x1
jax: 0.10.0
libtpu: 0.0.40
codegen_flags: <defaults>
</compile_context>

<pallas_src>
import functools

import jax
import jax.numpy as jnp
import numpy as np
from jax import lax
from jax.experimental import pallas as pl
from jax.experimental.pallas import tpu as pltpu

EPS = 1e-10
POW = 4             # self.pow in the module
EDGE_SCALE = 20.0   # scale used by edge_length when pow == 4
AMIPS_SCALE = 20.0  # scale used by amips_energy
LANE = 128
CHUNK = 8           # f32 sublanes per vreg; in-kernel compute granule (8, 128)


# ---------------------------------------------------------------------------
# Fused kernel: per-tet volume / AMIPS energy / edge^4 term, per-batch sums and
# the exact sum((V - mean)^4) variance, all in one pallas_call.
# ---------------------------------------------------------------------------
def _deftet_kernel(pos_ref, inv_ref, var_ref, amips_ref, edge_ref,
                   vols_ref, sv_ref, se_ref, sg_ref,
                   *, num_valid, n_tiles, n_chunks, batch_major):
    if batch_major:                       # grid = (B, n_tiles)
        b = pl.program_id(0)
        t = pl.program_id(1)
        vb = 0                            # vols scratch holds current batch only
    else:                                 # grid = (n_tiles, B), batch innermost
        t = pl.program_id(0)
        b = pl.program_id(1)
        vb = b

    zero_vec = jnp.zeros((CHUNK, LANE), jnp.float32)

    @pl.when(t == 0)
    def _init():
        sv_ref[b] = zero_vec
        se_ref[b] = zero_vec
        sg_ref[b] = zero_vec

    chunk_base = (vb * n_tiles + t) * n_chunks

    # ---- phase 1: vreg-resident per-tet math on (8, 128) chunks --------------
    def chunk_body(ci, carry):
        sv, se, sg = carry
        r0 = pl.multiple_of(ci * CHUNK, CHUNK)

        def p(c):
            return pos_ref[0, c, pl.ds(r0, CHUNK), :]        # (8, 128)

        def w(c):
            return inv_ref[c, pl.ds(r0, CHUNK), :]           # (8, 128)

        Ax, Ay, Az = p(0), p(1), p(2)
        Bx, By, Bz = p(3), p(4), p(5)
        Cx, Cy, Cz = p(6), p(7), p(8)
        Dx, Dy, Dz = p(9), p(10), p(11)

        # signed volume (scale = 1): V = -det([A-D; B-D; C-D]) / 6 (cofactor det)
        adx, ady, adz = Ax - Dx, Ay - Dy, Az - Dz
        bdx, bdy, bdz = Bx - Dx, By - Dy, Bz - Dz
        cdx, cdy, cdz = Cx - Dx, Cy - Dy, Cz - Dz
        det_v = (adx * (bdy * cdz - bdz * cdy)
                 - ady * (bdx * cdz - bdz * cdx)
                 + adz * (bdx * cdy - bdy * cdx))
        vol = det_v * (-1.0 / 6.0)

        # edge term (pow = 4); EDGE_SCALE hoisted to one constant multiply
        def q4(dx, dy, dz):
            x2, y2, z2 = dx * dx, dy * dy, dz * dz
            return x2 * x2 + y2 * y2 + z2 * z2

        edge = (q4(adx, ady, adz) + q4(bdx, bdy, bdz) + q4(cdx, cdy, cdz)
                + q4(Ax - Bx, Ay - By, Az - Bz)
                + q4(Ax - Cx, Ay - Cy, Az - Cz)
                + q4(Bx - Cx, By - Cy, Bz - Cz)) * (EDGE_SCALE ** 4)

        # AMIPS energy; AMIPS_SCALE hoisted out of the 3x3 Jacobian (EPS is
        # applied to the *scaled* det, preserving the original semantics).
        # NOTE: for padded (degenerate) tets O == 0 exactly, so trace == 0 and
        # energy == 0 * finite == 0 -- do not add EPS to trace or reorder.
        O = [[Bx - Ax, By - Ay, Bz - Az],
             [Cx - Ax, Cy - Ay, Cz - Az],
             [Dx - Ax, Dy - Ay, Dz - Az]]
        W = [[w(3 * k + j) for j in range(3)] for k in range(3)]
        J = [[O[i][0] * W[0][j] + O[i][1] * W[1][j] + O[i][2] * W[2][j]
              for j in range(3)] for i in range(3)]
        trace = sum(J[i][j] * J[i][j]
                    for i in range(3) for j in range(3)) * (AMIPS_SCALE ** 2)
        det_j = (J[0][0] * (J[1][1] * J[2][2] - J[1][2] * J[2][1])
                 - J[0][1] * (J[1][0] * J[2][2] - J[1][2] * J[2][0])
                 + J[0][2] * (J[1][0] * J[2][1] - J[1][1] * J[2][0])) \
            * (AMIPS_SCALE ** 3)
        pos_det = (det_j >= 0.0).astype(jnp.float32)
        bottom = jnp.exp((-1.0 / 3.0) * jnp.log(det_j * det_j + EPS))
        energy = trace * bottom * pos_det

        vols_ref[chunk_base + ci] = vol                      # VMEM-resident V
        return (sv + vol, se + energy, sg + edge)

    sv, se, sg = lax.fori_loop(0, n_chunks, chunk_body,
                               (zero_vec, zero_vec, zero_vec))
    sv_ref[b] += sv
    se_ref[b] += se
    sg_ref[b] += sg

    # ---- phase 2 (once per batch): reduce sums, exact variance from VMEM -----
    @pl.when(t == n_tiles - 1)
    def _finalize():
        inv_f = 1.0 / float(num_valid)
        sum_v = jnp.sum(sv_ref[b], keepdims=True)            # (1, 1)
        sum_e = jnp.sum(se_ref[b], keepdims=True)
        sum_g = jnp.sum(sg_ref[b], keepdims=True)
        mean_v = sum_v * inv_f

        vbase = vb * (n_tiles * n_chunks)
        full_chunks = num_valid // (CHUNK * LANE)            # static
        rem = num_valid % (CHUNK * LANE)                     # static

        acc = jnp.zeros((CHUNK, LANE), jnp.float32)
        if full_chunks > 0:
            def var_body(gc, a):
                d = vols_ref[vbase + gc] - mean_v
                d2 = d * d
                return a + d2 * d2
            acc = lax.fori_loop(0, full_chunks, var_body, acc, unroll=4)
        var_sum = jnp.sum(acc, keepdims=True)
        if rem:                                              # mask only the tail
            d = vols_ref[vbase + full_chunks] - mean_v
            d2 = d * d
            d4 = d2 * d2
            fidx = (lax.broadcasted_iota(jnp.int32, (CHUNK, LANE), 0) * LANE
                    + lax.broadcasted_iota(jnp.int32, (CHUNK, LANE), 1))
            var_sum = var_sum + jnp.sum(jnp.where(fidx < rem, d4, 0.0),
                                        keepdims=True)

        var_ref[0] = var_sum
        amips_ref[0] = sum_e * inv_f
        edge_ref[0] = sum_g * (1.0 / (6.0 * float(num_valid)))


# ---------------------------------------------------------------------------
# Wrappers
# ---------------------------------------------------------------------------
def _plan(num_tets, tile_rows):
    rows = pl.cdiv(num_tets, LANE)
    rows8 = pl.cdiv(rows, CHUNK) * CHUNK
    tile_r = max(CHUNK, min((int(tile_rows) // CHUNK) * CHUNK, rows8))
    rows_p = pl.cdiv(rows8, tile_r) * tile_r
    return tile_r, rows_p


def deftet_losses_from_packed(pos, inv, *, num_valid, tile_rows=512,
                              batch_parallel=False):
    """Preferred entry point.

    pos: (B, 12, rows_p, 128) f32, channel = vertex*3 + coord, tet = row*128+lane
    inv: (9,  rows_p, 128) f32, channel = row*3 + col of inverse_v
    Padded tets must be degenerate (all four vertices identical) with zero inv
    columns; the packing helpers below guarantee this.
    Returns (volume_variance[B], amips_energy[B], edge_length[B]).
    """
    B, C, rows_p, lane = pos.shape
    assert C == 12 and lane == LANE
    assert inv.shape == (9, rows_p, LANE)
    assert rows_p % CHUNK == 0 and rows_p * LANE >= num_valid

    tile_r = max(CHUNK, min((int(tile_rows) // CHUNK) * CHUNK, rows_p))
    while rows_p % tile_r:
        tile_r -= CHUNK
    n_tiles = rows_p // tile_r
    n_chunks = tile_r // CHUNK

    kernel = functools.partial(
        _deftet_kernel, num_valid=int(num_valid), n_tiles=n_tiles,
        n_chunks=n_chunks, batch_major=batch_parallel)

    vols_batches = 1 if batch_parallel else B

    if batch_parallel:
        # (B, n_tiles): v7x dual-TC via a "parallel" batch axis (B >= 2); inv is
        # re-streamed once per batch, vols scratch holds one batch only.
        grid = (B, n_tiles)
        pos_map = lambda b, t: (b, 0, t, 0)
        inv_map = lambda b, t: (0, t, 0)
        out_map = lambda b, t: (b, 0, 0)
        dims = ("parallel", "arbitrary")
    else:
        # (n_tiles, B): batch innermost, so the inv block index depends on the
        # tile axis only and every inv tile is DMA'd exactly once.
        grid = (n_tiles, B)
        pos_map = lambda t, b: (b, 0, t, 0)
        inv_map = lambda t, b: (0, t, 0)
        out_map = lambda t, b: (b, 0, 0)
        dims = ("arbitrary", "arbitrary")

    blk_bytes = (12 + 9) * tile_r * LANE * 4
    scratch_bytes = (vols_batches * rows_p * LANE + 3 * B * CHUNK * LANE) * 4
    vmem_bytes = int(min(2 * blk_bytes + scratch_bytes + (16 << 20), 100 << 20))

    var, amips, edge = pl.pallas_call(
        kernel,
        out_shape=(
            jax.ShapeDtypeStruct((B, 1, 1), jnp.float32),   # volume_variance
            jax.ShapeDtypeStruct((B, 1, 1), jnp.float32),   # amips_energy
            jax.ShapeDtypeStruct((B, 1, 1), jnp.float32),   # edge_length
        ),
        grid=grid,
        in_specs=[
            pl.BlockSpec((1, 12, tile_r, LANE), pos_map),
            pl.BlockSpec((9, tile_r, LANE), inv_map),
        ],
        out_specs=(
            pl.BlockSpec((1, 1, 1), out_map),
            pl.BlockSpec((1, 1, 1), out_map),
            pl.BlockSpec((1, 1, 1), out_map),
        ),
        scratch_shapes=[
            pltpu.VMEM((vols_batches * n_tiles * n_chunks, CHUNK, LANE),
                       jnp.float32),                        # per-tet V
            pltpu.VMEM((B, CHUNK, LANE), jnp.float32),      # sum V accumulator
            pltpu.VMEM((B, CHUNK, LANE), jnp.float32),      # sum energy acc
            pltpu.VMEM((B, CHUNK, LANE), jnp.float32),      # sum edge^4 acc
        ],
        compiler_params=pltpu.CompilerParams(
            dimension_semantics=dims, vmem_limit_bytes=vmem_bytes),
    )(pos, inv)

    return var[:, 0, 0], amips[:, 0, 0], edge[:, 0, 0]


def pack_inverse_v(inverse_v_fx3x3, rows_p):
    """One-time (init) packing of inverse_v to (9, rows_p, 128); pad is zero."""
    F = inverse_v_fx3x3.shape[0]
    Fp = rows_p * LANE
    inv = jnp.transpose(inverse_v_fx3x3.reshape(F, 9).astype(jnp.float32),
                        (1, 0))
    if Fp != F:
        inv = jnp.pad(inv, ((0, 0), (0, Fp - F)))
    return inv.reshape(9, rows_p, LANE)


def gather_tets_packed(vertice_pos_bxnx3, tet_bxfx4, rows_p):
    """Gather tet vertices directly into the (B, 12, rows_p, 128) kernel layout.

    Padding is applied to the small index tensor (padded tets reuse vertex 0 of
    the batch, i.e. are degenerate), so no relayout / pad pass touches the big
    position tensor.
    """
    B, F, _ = tet_bxfx4.shape
    Fp = rows_p * LANE
    idx = tet_bxfx4.astype(jnp.int32)
    if Fp != F:
        idx = jnp.pad(idx, ((0, 0), (0, Fp - F), (0, 0)))
    v_bx3xn = jnp.transpose(vertice_pos_bxnx3.astype(jnp.float32), (0, 2, 1))

    def one(vc, ix):                       # vc: (3, N), ix: (Fp, 4)
        g = vc[:, ix]                      # (3, Fp, 4)
        g = jnp.transpose(g, (2, 0, 1))    # (4, 3, Fp) -> channel = vert*3+coord
        return g.reshape(12, rows_p, LANE)

    return jax.vmap(one)(v_bx3xn, idx)


def deftet_losses_pallas(tet_bxfx4x3, inverse_v_fx3x3, *, tile_rows=512,
                         batch_parallel=False):
    """Compatibility entry taking the module's (B, F, 4, 3) layout (does one
    relayout; prefer gather_tets_packed + pack_inverse_v)."""
    B, F = tet_bxfx4x3.shape[0], tet_bxfx4x3.shape[1]
    _, rows_p = _plan(F, tile_rows)
    Fp = rows_p * LANE
    pos = jnp.transpose(tet_bxfx4x3.reshape(B, F, 12).astype(jnp.float32),
                        (0, 2, 1))
    if Fp != F:
        pos = jnp.pad(pos, ((0, 0), (0, 0), (0, Fp - F)))   # degenerate pad tets
    pos = pos.reshape(B, 12, rows_p, LANE)
    inv = pack_inverse_v(inverse_v_fx3x3, rows_p)
    return deftet_losses_from_packed(pos, inv, num_valid=F,
                                     tile_rows=tile_rows,
                                     batch_parallel=batch_parallel)


# ---------------------------------------------------------------------------
# Plain-JAX glue (module-level helpers) and pure-JAX reference
# ---------------------------------------------------------------------------
def gather_tets(vertice_pos_bxnx3, tet_bxfx4):
    return jax.vmap(lambda v, t: v[t])(vertice_pos_bxnx3, tet_bxfx4)


def tet_inverse_v(init_tet_pos_nx3, init_tet_fx4, scale=20.0):
    tet = init_tet_pos_nx3[init_tet_fx4]                       # (F, 4, 3)
    A, B, C, D = tet[:, 0], tet[:, 1], tet[:, 2], tet[:, 3]
    offset = jnp.stack([B - A, C - A, D - A], axis=1) * scale  # (F, 3, 3)
    det = jnp.linalg.det(offset)
    singular = (jnp.abs(det) < 1e-10)[:, None, None]
    eye = jnp.broadcast_to(jnp.eye(3, dtype=offset.dtype), offset.shape)
    safe = jnp.where(singular, eye, offset)
    return jnp.linalg.inv(safe)                                # (F, 3, 3)


def _det3(m):
    return (m[..., 0, 0] * (m[..., 1, 1] * m[..., 2, 2] - m[..., 1, 2] * m[..., 2, 1])
            - m[..., 0, 1] * (m[..., 1, 0] * m[..., 2, 2] - m[..., 1, 2] * m[..., 2, 0])
            + m[..., 0, 2] * (m[..., 1, 0] * m[..., 2, 1] - m[..., 1, 1] * m[..., 2, 0]))


def ref_losses(tet_bxfx4x3, inv_fx3x3):
    A, B, C, D = (tet_bxfx4x3[:, :, i, :] for i in range(4))
    m = jnp.stack([A - D, B - D, C - D], axis=2)
    V = -_det3(m) / 6.0
    mean_v = jnp.mean(V, axis=-1, keepdims=True)
    var_v = jnp.sum((V - mean_v) ** POW, axis=-1)
    off = jnp.stack([B - A, C - A, D - A], axis=2) * AMIPS_SCALE
    J = jnp.einsum("bfik,fkj->bfij", off, inv_fx3x3,
                   precision=jax.lax.Precision.HIGHEST)
    trace = jnp.sum(J ** 2, axis=(-1, -2))
    det = _det3(J)
    energy = trace * (det ** 2 + EPS) ** (-1.0 / 3.0) * (det >= 0)
    amips = jnp.mean(energy, axis=-1)
    s = EDGE_SCALE

    def e4(p, q):
        return jnp.sum(((p - q) * s) ** 4, axis=-1)

    sum_edge = (e4(A, D) + e4(B, D) + e4(C, D)
                + e4(A, B) + e4(A, C) + e4(B, C)).sum(axis=-1)
    edge = sum_edge / (6.0 * tet_bxfx4x3.shape[1])
    return var_v, amips, edge


if __name__ == "__main__":
    Bsz, N, F = 2, 64, 256

    key = jax.random.PRNGKey(0)
    k1, k2, k3 = jax.random.split(key, 3)

    vertice_pos = jax.random.uniform(k1, (Bsz, N, 3), jnp.float32) * 0.5
    tet_idx = jax.random.randint(k2, (Bsz, F, 4), 0, N, dtype=jnp.int32)
    init_tet_pos = jax.random.uniform(k3, (N, 3), jnp.float32) * 0.5

    # init-time "parameter": inverse_v from the initial tet positions, packed
    # once into the kernel layout.
    inverse_v = tet_inverse_v(init_tet_pos, tet_idx[0])              # (F, 3, 3)
    _, rows_p = _plan(F, tile_rows=512)
    inv_packed = pack_inverse_v(inverse_v, rows_p)                   # (9, rows_p, 128)

    @jax.jit
    def step(v_pos, t_idx, inv_p):
        pos = gather_tets_packed(v_pos, t_idx, rows_p)               # (B,12,rows_p,128)
        return deftet_losses_from_packed(pos, inv_p, num_valid=F)

    var_v, amips, edge = step(vertice_pos, tet_idx, inv_packed)
    jax.block_until_ready((var_v, amips, edge))

    # pure-JAX reference on the module's (B, F, 4, 3) layout
    tet_bxfx4x3 = gather_tets(vertice_pos, tet_idx)
    r_var, r_amips, r_edge = ref_losses(tet_bxfx4x3, inverse_v)

    np.testing.assert_allclose(np.asarray(var_v), np.asarray(r_var),
                               rtol=1e-2, atol=1e-5)
    np.testing.assert_allclose(np.asarray(amips), np.asarray(r_amips),
                               rtol=2e-2, atol=1e-3)
    np.testing.assert_allclose(np.asarray(edge), np.asarray(r_edge),
                               rtol=1e-2, atol=1e-4)

    # batch-parallel (v7x dual-TC) grid ordering via the compatibility entry
    var2, amips2, edge2 = jax.jit(
        functools.partial(deftet_losses_pallas, batch_parallel=True)
    )(tet_bxfx4x3, inverse_v)
    jax.block_until_ready((var2, amips2, edge2))
    np.testing.assert_allclose(np.asarray(var2), np.asarray(r_var),
                               rtol=1e-2, atol=1e-5)
    np.testing.assert_allclose(np.asarray(amips2), np.asarray(r_amips),
                               rtol=2e-2, atol=1e-3)
    np.testing.assert_allclose(np.asarray(edge2), np.asarray(r_edge),
                               rtol=1e-2, atol=1e-4)

    print("KERNEL_OK")
</pallas_src>

<mosaic_0001>
module attributes {stable_mosaic.version = 11 : i64} {
  func.func @_deftet_kernel(%arg0: i32, %arg1: i32, %arg2: memref<1x12x8x128xf32, #tpu.memory_space<vmem>>, %arg3: memref<9x8x128xf32, #tpu.memory_space<vmem>>, %arg4: memref<1x1x1xf32, #tpu.memory_space<vmem>>, %arg5: memref<1x1x1xf32, #tpu.memory_space<vmem>>, %arg6: memref<1x1x1xf32, #tpu.memory_space<vmem>>, %arg7: memref<2x8x128xf32, #tpu.memory_space<vmem>>, %arg8: memref<2x8x128xf32, #tpu.memory_space<vmem>>, %arg9: memref<2x8x128xf32, #tpu.memory_space<vmem>>, %arg10: memref<2x8x128xf32, #tpu.memory_space<vmem>>) attributes {dimension_semantics = [#tpu.dimension_semantics<arbitrary>, #tpu.dimension_semantics<arbitrary>], iteration_bounds = array<i64: 1, 2>, scalar_prefetch = 0 : i64, scratch_operands = 4 : i64, tpu.core_type = #tpu.core_type<tc>, window_params = [{transform_indices = @transform_0, window_bounds = array<i64: 1, 12, 8, 128>}, {transform_indices = @transform_1, window_bounds = array<i64: 9, 8, 128>}, {transform_indices = @transform_2, window_bounds = array<i64: 1, 1, 1>}, {transform_indices = @transform_3, window_bounds = array<i64: 1, 1, 1>}, {transform_indices = @transform_4, window_bounds = array<i64: 1, 1, 1>}]} {
    %cst = arith.constant 0.000000e+00 : f32
    %0 = vector.broadcast %cst : f32 to vector<8x128xf32>
    %c0_i32 = arith.constant 0 : i32
    %1 = arith.cmpi eq, %arg0, %c0_i32 : i32
    %2 = arith.extui %1 : i1 to i32
    %c0_i32_0 = arith.constant 0 : i32
    %3 = arith.cmpi ne, %2, %c0_i32_0 : i32
    scf.if %3 {
      %300 = arith.index_cast %arg1 : i32 to index
      %c0_70 = arith.constant 0 : index
      %c0_71 = arith.constant 0 : index
      %301 = vector.load %arg8[%300, %c0_70, %c0_71] : memref<2x8x128xf32, #tpu.memory_space<vmem>>, vector<1x8x128xf32>
      %302 = vector.shape_cast %301 : vector<1x8x128xf32> to vector<8x128xf32>
      %303 = vector.shape_cast %0 : vector<8x128xf32> to vector<1x8x128xf32>
      tpu.vector_store %arg8[%300, %c0_70, %c0_71], %303 {strides = array<i32>} : memref<2x8x128xf32, #tpu.memory_space<vmem>>, vector<1x8x128xf32>,
      %304 = arith.index_cast %arg1 : i32 to index
      %c0_72 = arith.constant 0 : index
      %c0_73 = arith.constant 0 : index
      %305 = vector.load %arg9[%304, %c0_72, %c0_73] : memref<2x8x128xf32, #tpu.memory_space<vmem>>, vector<1x8x128xf32>
      %306 = vector.shape_cast %305 : vector<1x8x128xf32> to vector<8x128xf32>
      %307 = vector.shape_cast %0 : vector<8x128xf32> to vector<1x8x128xf32>
      tpu.vector_store %arg9[%304, %c0_72, %c0_73], %307 {strides = array<i32>} : memref<2x8x128xf32, #tpu.memory_space<vmem>>, vector<1x8x128xf32>,
      %308 = arith.index_cast %arg1 : i32 to index
      %c0_74 = arith.constant 0 : index
      %c0_75 = arith.constant 0 : index
      %309 = vector.load %arg10[%308, %c0_74, %c0_75] : memref<2x8x128xf32, #tpu.memory_space<vmem>>, vector<1x8x128xf32>
      %310 = vector.shape_cast %309 : vector<1x8x128xf32> to vector<8x128xf32>
      %311 = vector.shape_cast %0 : vector<8x128xf32> to vector<1x8x128xf32>
      tpu.vector_store %arg10[%308, %c0_74, %c0_75], %311 {strides = array<i32>} : memref<2x8x128xf32, #tpu.memory_space<vmem>>, vector<1x8x128xf32>,
    } else {
    }
    %c1_i32 = arith.constant 1 : i32
    %4 = arith.muli %arg1, %c1_i32 : i32
    %5 = arith.addi %4, %arg0 : i32
    %c1_i32_1 = arith.constant 1 : i32
    %6 = arith.muli %5, %c1_i32_1 : i32
    %c0_i32_2 = arith.constant 0 : i32
    %c8_i32 = arith.constant 8 : i32
    %7 = arith.muli %c0_i32_2, %c8_i32 : i32
    %8 = tpu.assume_multiple %7, 8 : i32
    %c0 = arith.constant 0 : index
    %c0_3 = arith.constant 0 : index
    %9 = arith.index_cast %8 : i32 to index
    %c0_4 = arith.constant 0 : index
    %10 = vector.load %arg2[%c0, %c0_3, %9, %c0_4] : memref<1x12x8x128xf32, #tpu.memory_space<vmem>>, vector<1x1x8x128xf32>
    %11 = vector.shape_cast %10 : vector<1x1x8x128xf32> to vector<8x128xf32>
    %c0_5 = arith.constant 0 : index
    %c1 = arith.constant 1 : index
    %12 = arith.index_cast %8 : i32 to index
    %c0_6 = arith.constant 0 : index
    %13 = vector.load %arg2[%c0_5, %c1, %12, %c0_6] : memref<1x12x8x128xf32, #tpu.memory_space<vmem>>, vector<1x1x8x128xf32>
    %14 = vector.shape_cast %13 : vector<1x1x8x128xf32> to vector<8x128xf32>
    %c0_7 = arith.constant 0 : index
    %c2 = arith.constant 2 : index
    %15 = arith.index_cast %8 : i32 to index
    %c0_8 = arith.constant 0 : index
    %16 = vector.load %arg2[%c0_7, %c2, %15, %c0_8] : memref<1x12x8x128xf32, #tpu.memory_space<vmem>>, vector<1x1x8x128xf32>
    %17 = vector.shape_cast %16 : vector<1x1x8x128xf32> to vector<8x128xf32>
    %c0_9 = arith.constant 0 : index
    %c3 = arith.constant 3 : index
    %18 = arith.index_cast %8 : i32 to index
    %c0_10 = arith.constant 0 : index
    %19 = vector.load %arg2[%c0_9, %c3, %18, %c0_10] : memref<1x12x8x128xf32, #tpu.memory_space<vmem>>, vector<1x1x8x128xf32>
    %20 = vector.shape_cast %19 : vector<1x1x8x128xf32> to vector<8x128xf32>
    %c0_11 = arith.constant 0 : index
    %c4 = arith.constant 4 : index
    %21 = arith.index_cast %8 : i32 to index
    %c0_12 = arith.constant 0 : index
    %22 = vector.load %arg2[%c0_11, %c4, %21, %c0_12] : memref<1x12x8x128xf32, #tpu.memory_space<vmem>>, vector<1x1x8x128xf32>
    %23 = vector.shape_cast %22 : vector<1x1x8x128xf32> to vector<8x128xf32>
    %c0_13 = arith.constant 0 : index
    %c5 = arith.constant 5 : index
    %24 = arith.index_cast %8 : i32 to index
    %c0_14 = arith.constant 0 : index
    %25 = vector.load %arg2[%c0_13, %c5, %24, %c0_14] : memref<1x12x8x128xf32, #tpu.memory_space<vmem>>, vector<1x1x8x128xf32>
    %26 = vector.shape_cast %25 : vector<1x1x8x128xf32> to vector<8x128xf32>
    %c0_15 = arith.constant 0 : index
    %c6 = arith.constant 6 : index
    %27 = arith.index_cast %8 : i32 to index
    %c0_16 = arith.constant 0 : index
    %28 = vector.load %arg2[%c0_15, %c6, %27, %c0_16] : memref<1x12x8x128xf32, #tpu.memory_space<vmem>>, vector<1x1x8x128xf32>
    %29 = vector.shape_cast %28 : vector<1x1x8x128xf32> to vector<8x128xf32>
    %c0_17 = arith.constant 0 : index
    %c7 = arith.constant 7 : index
    %30 = arith.index_cast %8 : i32 to index
    %c0_18 = arith.constant 0 : index
    %31 = vector.load %arg2[%c0_17, %c7, %30, %c0_18] : memref<1x12x8x128xf32, #tpu.memory_space<vmem>>, vector<1x1x8x128xf32>
    %32 = vector.shape_cast %31 : vector<1x1x8x128xf32> to vector<8x128xf32>
    %c0_19 = arith.constant 0 : index
    %c8 = arith.constant 8 : index
    %33 = arith.index_cast %8 : i32 to index
    %c0_20 = arith.constant 0 : index
    %34 = vector.load %arg2[%c0_19, %c8, %33, %c0_20] : memref<1x12x8x128xf32, #tpu.memory_space<vmem>>, vector<1x1x8x128xf32>
    %35 = vector.shape_cast %34 : vector<1x1x8x128xf32> to vector<8x128xf32>
    %c0_21 = arith.constant 0 : index
    %c9 = arith.constant 9 : index
    %36 = arith.index_cast %8 : i32 to index
    %c0_22 = arith.constant 0 : index
    %37 = vector.load %arg2[%c0_21, %c9, %36, %c0_22] : memref<1x12x8x128xf32, #tpu.memory_space<vmem>>, vector<1x1x8x128xf32>
    %38 = vector.shape_cast %37 : vector<1x1x8x128xf32> to vector<8x128xf32>
    %c0_23 = arith.constant 0 : index
    %c10 = arith.constant 10 : index
    %39 = arith.index_cast %8 : i32 to index
    %c0_24 = arith.constant 0 : index
    %40 = vector.load %arg2[%c0_23, %c10, %39, %c0_24] : memref<1x12x8x128xf32, #tpu.memory_space<vmem>>, vector<1x1x8x128xf32>
    %41 = vector.shape_cast %40 : vector<1x1x8x128xf32> to vector<8x128xf32>
    %c0_25 = arith.constant 0 : index
    %c11 = arith.constant 11 : index
    %42 = arith.index_cast %8 : i32 to index
    %c0_26 = arith.constant 0 : index
    %43 = vector.load %arg2[%c0_25, %c11, %42, %c0_26] : memref<1x12x8x128xf32, #tpu.memory_space<vmem>>, vector<1x1x8x128xf32>
    %44 = vector.shape_cast %43 : vector<1x1x8x128xf32> to vector<8x128xf32>
    %45 = arith.subf %11, %38 : vector<8x128xf32>
    %46 = arith.subf %14, %41 : vector<8x128xf32>
    %47 = arith.subf %17, %44 : vector<8x128xf32>
    %48 = arith.subf %20, %38 : vector<8x128xf32>
    %49 = arith.subf %23, %41 : vector<8x128xf32>
    %50 = arith.subf %26, %44 : vector<8x128xf32>
    %51 = arith.subf %29, %38 : vector<8x128xf32>
    %52 = arith.subf %32, %41 : vector<8x128xf32>
    %53 = arith.subf %35, %44 : vector<8x128xf32>
    %54 = arith.mulf %49, %53 : vector<8x128xf32>
    %55 = arith.mulf %50, %52 : vector<8x128xf32>
    %56 = arith.subf %54, %55 : vector<8x128xf32>
    %57 = arith.mulf %45, %56 : vector<8x128xf32>
    %58 = arith.mulf %48, %53 : vector<8x128xf32>
    %59 = arith.mulf %50, %51 : vector<8x128xf32>
    %60 = arith.subf %58, %59 : vector<8x128xf32>
    %61 = arith.mulf %46, %60 : vector<8x128xf32>
    %62 = arith.subf %57, %61 : vector<8x128xf32>
    %63 = arith.mulf %48, %52 : vector<8x128xf32>
    %64 = arith.mulf %49, %51 : vector<8x128xf32>
    %65 = arith.subf %63, %64 : vector<8x128xf32>
    %66 = arith.mulf %47, %65 : vector<8x128xf32>
    %67 = arith.addf %62, %66 : vector<8x128xf32>
    %cst_27 = arith.constant -0.166666672 : f32
    %68 = vector.broadcast %cst_27 : f32 to vector<8x128xf32>
    %69 = arith.mulf %67, %68 : vector<8x128xf32>
    %70 = arith.mulf %45, %45 : vector<8x128xf32>
    %71 = arith.mulf %46, %46 : vector<8x128xf32>
    %72 = arith.mulf %47, %47 : vector<8x128xf32>
    %73 = arith.mulf %70, %70 : vector<8x128xf32>
    %74 = arith.mulf %71, %71 : vector<8x128xf32>
    %75 = arith.addf %73, %74 : vector<8x128xf32>
    %76 = arith.mulf %72, %72 : vector<8x128xf32>
    %77 = arith.addf %75, %76 : vector<8x128xf32>
    %78 = arith.mulf %48, %48 : vector<8x128xf32>
    %79 = arith.mulf %49, %49 : vector<8x128xf32>
    %80 = arith.mulf %50, %50 : vector<8x128xf32>
    %81 = arith.mulf %78, %78 : vector<8x128xf32>
    %82 = arith.mulf %79, %79 : vector<8x128xf32>
    %83 = arith.addf %81, %82 : vector<8x128xf32>
    %84 = arith.mulf %80, %80 : vector<8x128xf32>
    %85 = arith.addf %83, %84 : vector<8x128xf32>
    %86 = arith.addf %77, %85 : vector<8x128xf32>
    %87 = arith.mulf %51, %51 : vector<8x128xf32>
    %88 = arith.mulf %52, %52 : vector<8x128xf32>
    %89 = arith.mulf %53, %53 : vector<8x128xf32>
    %90 = arith.mulf %87, %87 : vector<8x128xf32>
    %91 = arith.mulf %88, %88 : vector<8x128xf32>
    %92 = arith.addf %90, %91 : vector<8x128xf32>
    %93 = arith.mulf %89, %89 : vector<8x128xf32>
    %94 = arith.addf %92, %93 : vector<8x128xf32>
    %95 = arith.addf %86, %94 : vector<8x128xf32>
    %96 = arith.subf %11, %20 : vector<8x128xf32>
    %97 = arith.subf %14, %23 : vector<8x128xf32>
    %98 = arith.subf %17, %26 : vector<8x128xf32>
    %99 = arith.mulf %96, %96 : vector<8x128xf32>
    %100 = arith.mulf %97, %97 : vector<8x128xf32>
    %101 = arith.mulf %98, %98 : vector<8x128xf32>
    %102 = arith.mulf %99, %99 : vector<8x128xf32>
    %103 = arith.mulf %100, %100 : vector<8x128xf32>
    %104 = arith.addf %102, %103 : vector<8x128xf32>
    %105 = arith.mulf %101, %101 : vector<8x128xf32>
    %106 = arith.addf %104, %105 : vector<8x128xf32>
    %107 = arith.addf %95, %106 : vector<8x128xf32>
    %108 = arith.subf %11, %29 : vector<8x128xf32>
    %109 = arith.subf %14, %32 : vector<8x128xf32>
    %110 = arith.subf %17, %35 : vector<8x128xf32>
    %111 = arith.mulf %108, %108 : vector<8x128xf32>
    %112 = arith.mulf %109, %109 : vector<8x128xf32>
    %113 = arith.mulf %110, %110 : vector<8x128xf32>
    %114 = arith.mulf %111, %111 : vector<8x128xf32>
    %115 = arith.mulf %112, %112 : vector<8x128xf32>
    %116 = arith.addf %114, %115 : vector<8x128xf32>
    %117 = arith.mulf %113, %113 : vector<8x128xf32>
    %118 = arith.addf %116, %117 : vector<8x128xf32>
    %119 = arith.addf %107, %118 : vector<8x128xf32>
    %120 = arith.subf %20, %29 : vector<8x128xf32>
    %121 = arith.subf %23, %32 : vector<8x128xf32>
    %122 = arith.subf %26, %35 : vector<8x128xf32>
    %123 = arith.mulf %120, %120 : vector<8x128xf32>
    %124 = arith.mulf %121, %121 : vector<8x128xf32>
    %125 = arith.mulf %122, %122 : vector<8x128xf32>
    %126 = arith.mulf %123, %123 : vector<8x128xf32>
    %127 = arith.mulf %124, %124 : vector<8x128xf32>
    %128 = arith.addf %126, %127 : vector<8x128xf32>
    %129 = arith.mulf %125, %125 : vector<8x128xf32>
    %130 = arith.addf %128, %129 : vector<8x128xf32>
    %131 = arith.addf %119, %130 : vector<8x128xf32>
    %cst_28 = arith.constant 1.600000e+05 : f32
    %132 = vector.broadcast %cst_28 : f32 to vector<8x128xf32>
    %133 = arith.mulf %131, %132 : vector<8x128xf32>
    %134 = arith.subf %20, %11 : vector<8x128xf32>
    %135 = arith.subf %23, %14 : vector<8x128xf32>
    %136 = arith.subf %26, %17 : vector<8x128xf32>
    %137 = arith.subf %29, %11 : vector<8x128xf32>
    %138 = arith.subf %32, %14 : vector<8x128xf32>
    %139 = arith.subf %35, %17 : vector<8x128xf32>
    %140 = arith.subf %38, %11 : vector<8x128xf32>
    %141 = arith.subf %41, %14 : vector<8x128xf32>
    %142 = arith.subf %44, %17 : vector<8x128xf32>
    %c0_29 = arith.constant 0 : index
    %143 = arith.index_cast %8 : i32 to index
    %c0_30 = arith.constant 0 : index
    %144 = vector.load %arg3[%c0_29, %143, %c0_30] : memref<9x8x128xf32, #tpu.memory_space<vmem>>, vector<1x8x128xf32>
    %145 = vector.shape_cast %144 : vector<1x8x128xf32> to vector<8x128xf32>
    %c1_31 = arith.constant 1 : index
    %146 = arith.index_cast %8 : i32 to index
    %c0_32 = arith.constant 0 : index
    %147 = vector.load %arg3[%c1_31, %146, %c0_32] : memref<9x8x128xf32, #tpu.memory_space<vmem>>, vector<1x8x128xf32>
    %148 = vector.shape_cast %147 : vector<1x8x128xf32> to vector<8x128xf32>
    %c2_33 = arith.constant 2 : index
    %149 = arith.index_cast %8 : i32 to index
    %c0_34 = arith.constant 0 : index
    %150 = vector.load %arg3[%c2_33, %149, %c0_34] : memref<9x8x128xf32, #tpu.memory_space<vmem>>, vector<1x8x128xf32>
    %151 = vector.shape_cast %150 : vector<1x8x128xf32> to vector<8x128xf32>
    %c3_35 = arith.constant 3 : index
    %152 = arith.index_cast %8 : i32 to index
    %c0_36 = arith.constant 0 : index
    %153 = vector.load %arg3[%c3_35, %152, %c0_36] : memref<9x8x128xf32, #tpu.memory_space<vmem>>, vector<1x8x128xf32>
    %154 = vector.shape_cast %153 : vector<1x8x128xf32> to vector<8x128xf32>
    %c4_37 = arith.constant 4 : index
    %155 = arith.index_cast %8 : i32 to index
    %c0_38 = arith.constant 0 : index
    %156 = vector.load %arg3[%c4_37, %155, %c0_38] : memref<9x8x128xf32, #tpu.memory_space<vmem>>, vector<1x8x128xf32>
    %157 = vector.shape_cast %156 : vector<1x8x128xf32> to vector<8x128xf32>
    %c5_39 = arith.constant 5 : index
    %158 = arith.index_cast %8 : i32 to index
    %c0_40 = arith.constant 0 : index
    %159 = vector.load %arg3[%c5_39, %158, %c0_40] : memref<9x8x128xf32, #tpu.memory_space<vmem>>, vector<1x8x128xf32>
    %160 = vector.shape_cast %159 : vector<1x8x128xf32> to vector<8x128xf32>
    %c6_41 = arith.constant 6 : index
    %161 = arith.index_cast %8 : i32 to index
    %c0_42 = arith.constant 0 : index
    %162 = vector.load %arg3[%c6_41, %161, %c0_42] : memref<9x8x128xf32, #tpu.memory_space<vmem>>, vector<1x8x128xf32>
    %163 = vector.shape_cast %162 : vector<1x8x128xf32> to vector<8x128xf32>
    %c7_43 = arith.constant 7 : index
    %164 = arith.index_cast %8 : i32 to index
    %c0_44 = arith.constant 0 : index
    %165 = vector.load %arg3[%c7_43, %164, %c0_44] : memref<9x8x128xf32, #tpu.memory_space<vmem>>, vector<1x8x128xf32>
    %166 = vector.shape_cast %165 : vector<1x8x128xf32> to vector<8x128xf32>
    %c8_45 = arith.constant 8 : index
    %167 = arith.index_cast %8 : i32 to index
    %c0_46 = arith.constant 0 : index
    %168 = vector.load %arg3[%c8_45, %167, %c0_46] : memref<9x8x128xf32, #tpu.memory_space<vmem>>, vector<1x8x128xf32>
    %169 = vector.shape_cast %168 : vector<1x8x128xf32> to vector<8x128xf32>
    %170 = arith.mulf %134, %145 : vector<8x128xf32>
    %171 = arith.mulf %135, %154 : vector<8x128xf32>
    %172 = arith.addf %170, %171 : vector<8x128xf32>
    %173 = arith.mulf %136, %163 : vector<8x128xf32>
    %174 = arith.addf %172, %173 : vector<8x128xf32>
    %175 = arith.mulf %134, %148 : vector<8x128xf32>
    %176 = arith.mulf %135, %157 : vector<8x128xf32>
    %177 = arith.addf %175, %176 : vector<8x128xf32>
    %178 = arith.mulf %136, %166 : vector<8x128xf32>
    %179 = arith.addf %177, %178 : vector<8x128xf32>
    %180 = arith.mulf %134, %151 : vector<8x128xf32>
    %181 = arith.mulf %135, %160 : vector<8x128xf32>
    %182 = arith.addf %180, %181 : vector<8x128xf32>
    %183 = arith.mulf %136, %169 : vector<8x128xf32>
    %184 = arith.addf %182, %183 : vector<8x128xf32>
    %185 = arith.mulf %137, %145 : vector<8x128xf32>
    %186 = arith.mulf %138, %154 : vector<8x128xf32>
    %187 = arith.addf %185, %186 : vector<8x128xf32>
    %188 = arith.mulf %139, %163 : vector<8x128xf32>
    %189 = arith.addf %187, %188 : vector<8x128xf32>
    %190 = arith.mulf %137, %148 : vector<8x128xf32>
    %191 = arith.mulf %138, %157 : vector<8x128xf32>
    %192 = arith.addf %190, %191 : vector<8x128xf32>
    %193 = arith.mulf %139, %166 : vector<8x128xf32>
    %194 = arith.addf %192, %193 : vector<8x128xf32>
    %195 = arith.mulf %137, %151 : vector<8x128xf32>
    %196 = arith.mulf %138, %160 : vector<8x128xf32>
    %197 = arith.addf %195, %196 : vector<8x128xf32>
    %198 = arith.mulf %139, %169 : vector<8x128xf32>
    %199 = arith.addf %197, %198 : vector<8x128xf32>
    %200 = arith.mulf %140, %145 : vector<8x128xf32>
    %201 = arith.mulf %141, %154 : vector<8x128xf32>
    %202 = arith.addf %200, %201 : vector<8x128xf32>
    %203 = arith.mulf %142, %163 : vector<8x128xf32>
    %204 = arith.addf %202, %203 : vector<8x128xf32>
    %205 = arith.mulf %140, %148 : vector<8x128xf32>
    %206 = arith.mulf %141, %157 : vector<8x128xf32>
    %207 = arith.addf %205, %206 : vector<8x128xf32>
    %208 = arith.mulf %142, %166 : vector<8x128xf32>
    %209 = arith.addf %207, %208 : vector<8x128xf32>
    %210 = arith.mulf %140, %151 : vector<8x128xf32>
    %211 = arith.mulf %141, %160 : vector<8x128xf32>
    %212 = arith.addf %210, %211 : vector<8x128xf32>
    %213 = arith.mulf %142, %169 : vector<8x128xf32>
    %214 = arith.addf %212, %213 : vector<8x128xf32>
    %215 = arith.mulf %174, %174 : vector<8x128xf32>
    %cst_47 = arith.constant 0.000000e+00 : f32
    %216 = vector.broadcast %cst_47 : f32 to vector<8x128xf32>
    %217 = arith.addf %216, %215 : vector<8x128xf32>
    %218 = arith.mulf %179, %179 : vector<8x128xf32>
    %219 = arith.addf %217, %218 : vector<8x128xf32>
    %220 = arith.mulf %184, %184 : vector<8x128xf32>
    %221 = arith.addf %219, %220 : vector<8x128xf32>
    %222 = arith.mulf %189, %189 : vector<8x128xf32>
    %223 = arith.addf %221, %222 : vector<8x128xf32>
    %224 = arith.mulf %194, %194 : vector<8x128xf32>
    %225 = arith.addf %223, %224 : vector<8x128xf32>
    %226 = arith.mulf %199, %199 : vector<8x128xf32>
    %227 = arith.addf %225, %226 : vector<8x128xf32>
    %228 = arith.mulf %204, %204 : vector<8x128xf32>
    %229 = arith.addf %227, %228 : vector<8x128xf32>
    %230 = arith.mulf %209, %209 : vector<8x128xf32>
    %231 = arith.addf %229, %230 : vector<8x128xf32>
    %232 = arith.mulf %214, %214 : vector<8x128xf32>
    %233 = arith.addf %231, %232 : vector<8x128xf32>
    %cst_48 = arith.constant 4.000000e+02 : f32
    %234 = vector.broadcast %cst_48 : f32 to vector<8x128xf32>
    %235 = arith.mulf %233, %234 : vector<8x128xf32>
    %236 = arith.mulf %194, %214 : vector<8x128xf32>
    %237 = arith.mulf %199, %209 : vector<8x128xf32>
    %238 = arith.subf %236, %237 : vector<8x128xf32>
    %239 = arith.mulf %174, %238 : vector<8x128xf32>
    %240 = arith.mulf %189, %214 : vector<8x128xf32>
    %241 = arith.mulf %199, %204 : vector<8x128xf32>
    %242 = arith.subf %240, %241 : vector<8x128xf32>
    %243 = arith.mulf %179, %242 : vector<8x128xf32>
    %244 = arith.subf %239, %243 : vector<8x128xf32>
    %245 = arith.mulf %189, %209 : vector<8x128xf32>
    %246 = arith.mulf %194, %204 : vector<8x128xf32>
    %247 = arith.subf %245, %246 : vector<8x128xf32>
    %248 = arith.mulf %184, %247 : vector<8x128xf32>
    %249 = arith.addf %244, %248 : vector<8x128xf32>
    %cst_49 = arith.constant 8.000000e+03 : f32
    %250 = vector.broadcast %cst_49 : f32 to vector<8x128xf32>
    %251 = arith.mulf %249, %250 : vector<8x128xf32>
    %cst_50 = arith.constant 0.000000e+00 : f32
    %252 = vector.broadcast %cst_50 : f32 to vector<8x128xf32>
    %253 = arith.cmpf oge, %251, %252 : vector<8x128xf32>
    %254 = arith.extui %253 : vector<8x128xi1> to vector<8x128xi32>
    %255 = arith.sitofp %254 : vector<8x128xi32> to vector<8x128xf32>
    %256 = arith.mulf %251, %251 : vector<8x128xf32>
    %cst_51 = arith.constant 1.000000e-10 : f32
    %257 = vector.broadcast %cst_51 : f32 to vector<8x128xf32>
    %258 = arith.addf %256, %257 : vector<8x128xf32>
    %259 = math.log %258 : vector<8x128xf32>
    %cst_52 = arith.constant -0.333333343 : f32
    %260 = vector.broadcast %cst_52 : f32 to vector<8x128xf32>
    %261 = arith.mulf %260, %259 : vector<8x128xf32>
    %262 = math.exp %261 : vector<8x128xf32>
    %263 = arith.mulf %235, %262 : vector<8x128xf32>
    %264 = arith.mulf %263, %255 : vector<8x128xf32>
    %265 = arith.addi %6, %c0_i32_2 : i32
    %266 = arith.index_cast %265 : i32 to index
    %c0_53 = arith.constant 0 : index
    %c0_54 = arith.constant 0 : index
    %267 = vector.load %arg7[%266, %c0_53, %c0_54] : memref<2x8x128xf32, #tpu.memory_space<vmem>>, vector<1x8x128xf32>
    %268 = vector.shape_cast %267 : vector<1x8x128xf32> to vector<8x128xf32>
    %269 = vector.shape_cast %69 : vector<8x128xf32> to vector<1x8x128xf32>
    tpu.vector_store %arg7[%266, %c0_53, %c0_54], %269 {strides = array<i32>} : memref<2x8x128xf32, #tpu.memory_space<vmem>>, vector<1x8x128xf32>,
    %270 = arith.addf %0, %69 : vector<8x128xf32>
    %271 = arith.addf %0, %264 : vector<8x128xf32>
    %272 = arith.addf %0, %133 : vector<8x128xf32>
    %c1_i32_55 = arith.constant 1 : i32
    %273 = arith.index_cast %arg1 : i32 to index
    %c0_56 = arith.constant 0 : index
    %c0_57 = arith.constant 0 : index
    %274 = vector.load %arg8[%273, %c0_56, %c0_57] : memref<2x8x128xf32, #tpu.memory_space<vmem>>, vector<1x8x128xf32>
    %275 = vector.shape_cast %274 : vector<1x8x128xf32> to vector<8x128xf32>
    %276 = arith.addf %275, %270 : vector<8x128xf32>
    %277 = arith.index_cast %arg1 : i32 to index
    %c0_58 = arith.constant 0 : index
    %c0_59 = arith.constant 0 : index
    %278 = vector.load %arg8[%277, %c0_58, %c0_59] : memref<2x8x128xf32, #tpu.memory_space<vmem>>, vector<1x8x128xf32>
    %279 = vector.shape_cast %278 : vector<1x8x128xf32> to vector<8x128xf32>
    %280 = vector.shape_cast %276 : vector<8x128xf32> to vector<1x8x128xf32>
    tpu.vector_store %arg8[%277, %c0_58, %c0_59], %280 {strides = array<i32>} : memref<2x8x128xf32, #tpu.memory_space<vmem>>, vector<1x8x128xf32>,
    %281 = arith.index_cast %arg1 : i32 to index
    %c0_60 = arith.constant 0 : index
    %c0_61 = arith.constant 0 : index
    %282 = vector.load %arg9[%281, %c0_60, %c0_61] : memref<2x8x128xf32, #tpu.memory_space<vmem>>, vector<1x8x128xf32>
    %283 = vector.shape_cast %282 : vector<1x8x128xf32> to vector<8x128xf32>
    %284 = arith.addf %283, %271 : vector<8x128xf32>
    %285 = arith.index_cast %arg1 : i32 to index
    %c0_62 = arith.constant 0 : index
    %c0_63 = arith.constant 0 : index
    %286 = vector.load %arg9[%285, %c0_62, %c0_63] : memref<2x8x128xf32, #tpu.memory_space<vmem>>, vector<1x8x128xf32>
    %287 = vector.shape_cast %286 : vector<1x8x128xf32> to vector<8x128xf32>
    %288 = vector.shape_cast %284 : vector<8x128xf32> to vector<1x8x128xf32>
    tpu.vector_store %arg9[%285, %c0_62, %c0_63], %288 {strides = array<i32>} : memref<2x8x128xf32, #tpu.memory_space<vmem>>, vector<1x8x128xf32>,
    %289 = arith.index_cast %arg1 : i32 to index
    %c0_64 = arith.constant 0 : index
    %c0_65 = arith.constant 0 : index
    %290 = vector.load %arg10[%289, %c0_64, %c0_65] : memref<2x8x128xf32, #tpu.memory_space<vmem>>, vector<1x8x128xf32>
    %291 = vector.shape_cast %290 : vector<1x8x128xf32> to vector<8x128xf32>
    %292 = arith.addf %291, %272 : vector<8x128xf32>
    %293 = arith.index_cast %arg1 : i32 to index
    %c0_66 = arith.constant 0 : index
    %c0_67 = arith.constant 0 : index
    %294 = vector.load %arg10[%293, %c0_66, %c0_67] : memref<2x8x128xf32, #tpu.memory_space<vmem>>, vector<1x8x128xf32>
    %295 = vector.shape_cast %294 : vector<1x8x128xf32> to vector<8x128xf32>
    %296 = vector.shape_cast %292 : vector<8x128xf32> to vector<1x8x128xf32>
    tpu.vector_store %arg10[%293, %c0_66, %c0_67], %296 {strides = array<i32>} : memref<2x8x128xf32, #tpu.memory_space<vmem>>, vector<1x8x128xf32>,
    %c0_i32_68 = arith.constant 0 : i32
    %297 = arith.cmpi eq, %arg0, %c0_i32_68 : i32
    %298 = arith.extui %297 : i1 to i32
    %c0_i32_69 = arith.constant 0 : i32
    %299 = arith.cmpi ne, %298, %c0_i32_69 : i32
    scf.if %299 {
      %300 = arith.index_cast %arg1 : i32 to index
      %c0_70 = arith.constant 0 : index
      %c0_71 = arith.constant 0 : index
      %301 = vector.load %arg8[%300, %c0_70, %c0_71] : memref<2x8x128xf32, #tpu.memory_space<vmem>>, vector<1x8x128xf32>
      %302 = vector.shape_cast %301 : vector<1x8x128xf32> to vector<8x128xf32>
      %303 = vector.shape_cast %302 : vector<8x128xf32> to vector<1x8x128xf32>
      %cst_72 = arith.constant dense<0.000000e+00> : vector<1xf32>
      %304 = vector.multi_reduction <add>, %303, %cst_72 [1, 2] : vector<1x8x128xf32> to vector<1xf32>
      %305 = vector.shape_cast %304 : vector<1xf32> to vector<1x1x1xf32>
      %306 = vector.extract %305[0, 0, 0] : f32 from vector<1x1x1xf32>
      %307 = vector.broadcast %306 : f32 to vector<1x1xf32>
      %308 = arith.index_cast %arg1 : i32 to index
      %c0_73 = arith.constant 0 : index
      %c0_74 = arith.constant 0 : index
      %309 = vector.load %arg9[%308, %c0_73, %c0_74] : memref<2x8x128xf32, #tpu.memory_space<vmem>>, vector<1x8x128xf32>
      %310 = vector.shape_cast %309 : vector<1x8x128xf32> to vector<8x128xf32>
      %311 = vector.shape_cast %310 : vector<8x128xf32> to vector<1x8x128xf32>
      %cst_75 = arith.constant dense<0.000000e+00> : vector<1xf32>
      %312 = vector.multi_reduction <add>, %311, %cst_75 [1, 2] : vector<1x8x128xf32> to vector<1xf32>
      %313 = vector.shape_cast %312 : vector<1xf32> to vector<1x1x1xf32>
      %314 = vector.extract %313[0, 0, 0] : f32 from vector<1x1x1xf32>
      %315 = vector.broadcast %314 : f32 to vector<1x1xf32>
      %316 = arith.index_cast %arg1 : i32 to index
      %c0_76 = arith.constant 0 : index
      %c0_77 = arith.constant 0 : index
      %317 = vector.load %arg10[%316, %c0_76, %c0_77] : memref<2x8x128xf32, #tpu.memory_space<vmem>>, vector<1x8x128xf32>
      %318 = vector.shape_cast %317 : vector<1x8x128xf32> to vector<8x128xf32>
      %319 = vector.shape_cast %318 : vector<8x128xf32> to vector<1x8x128xf32>
      %cst_78 = arith.constant dense<0.000000e+00> : vector<1xf32>
      %320 = vector.multi_reduction <add>, %319, %cst_78 [1, 2] : vector<1x8x128xf32> to vector<1xf32>
      %321 = vector.shape_cast %320 : vector<1xf32> to vector<1x1x1xf32>
      %322 = vector.extract %321[0, 0, 0] : f32 from vector<1x1x1xf32>
      %323 = vector.broadcast %322 : f32 to vector<1x1xf32>
      %cst_79 = arith.constant 3.906250e-03 : f32
      %324 = vector.broadcast %cst_79 : f32 to vector<1x1xf32>
      %325 = arith.mulf %307, %324 : vector<1x1xf32>
      %c1_i32_80 = arith.constant 1 : i32
      %326 = arith.muli %arg1, %c1_i32_80 : i32
      %cst_81 = arith.constant 0.000000e+00 : f32
      %327 = vector.broadcast %cst_81 : f32 to vector<8x128xf32>
      %328 = vector.shape_cast %327 : vector<8x128xf32> to vector<1x8x128xf32>
      %cst_82 = arith.constant dense<0.000000e+00> : vector<1xf32>
      %329 = vector.multi_reduction <add>, %328, %cst_82 [1, 2] : vector<1x8x128xf32> to vector<1xf32>
      %330 = vector.shape_cast %329 : vector<1xf32> to vector<1x1x1xf32>
      %331 = vector.extract %330[0, 0, 0] : f32 from vector<1x1x1xf32>
      %332 = vector.broadcast %331 : f32 to vector<1x1xf32>
      %c0_i32_83 = arith.constant 0 : i32
      %333 = arith.addi %326, %c0_i32_83 : i32
      %334 = arith.index_cast %333 : i32 to index
      %c0_84 = arith.constant 0 : index
      %c0_85 = arith.constant 0 : index
      %335 = vector.load %arg7[%334, %c0_84, %c0_85] : memref<2x8x128xf32, #tpu.memory_space<vmem>>, vector<1x8x128xf32>
      %336 = vector.shape_cast %335 : vector<1x8x128xf32> to vector<8x128xf32>
      %337 = vector.broadcast %325 : vector<1x1xf32> to vector<8x128xf32>
      %338 = arith.subf %336, %337 : vector<8x128xf32>
      %339 = arith.mulf %338, %338 : vector<8x128xf32>
      %340 = arith.mulf %339, %339 : vector<8x128xf32>
      %341 = tpu.iota {dimensions = array<i32: 0>} : vector<8x128xi32>
      %c128_i32 = arith.constant 128 : i32
      %342 = vector.broadcast %c128_i32 : i32 to vector<8x128xi32>
      %343 = arith.muli %341, %342 : vector<8x128xi32>
      %344 = tpu.iota {dimensions = array<i32: 1>} : vector<8x128xi32>
      %345 = arith.addi %343, %344 : vector<8x128xi32>
      %c256_i32 = arith.constant 256 : i32
      %346 = vector.broadcast %c256_i32 : i32 to vector<8x128xi32>
      %347 = arith.cmpi slt, %345, %346 : vector<8x128xi32>
      %cst_86 = arith.constant 0.000000e+00 : f32
      %348 = vector.broadcast %cst_86 : f32 to vector<8x128xf32>
      %349 = arith.select %347, %340, %348 : vector<8x128xi1>, vector<8x128xf32>
      %350 = vector.shape_cast %349 : vector<8x128xf32> to vector<1x8x128xf32>
      %cst_87 = arith.constant dense<0.000000e+00> : vector<1xf32>
      %351 = vector.multi_reduction <add>, %350, %cst_87 [1, 2] : vector<1x8x128xf32> to vector<1xf32>
      %352 = vector.shape_cast %351 : vector<1xf32> to vector<1x1x1xf32>
      %353 = vector.extract %352[0, 0, 0] : f32 from vector<1x1x1xf32>
      %354 = vector.broadcast %353 : f32 to vector<1x1xf32>
      %355 = arith.addf %332, %354 : vector<1x1xf32>
      %c0_88 = arith.constant 0 : index
      %c0_89 = arith.constant 0 : index
      %c0_90 = arith.constant 0 : index
      %356 = vector.load %arg4[%c0_88, %c0_89, %c0_90] : memref<1x1x1xf32, #tpu.memory_space<vmem>>, vector<1x1x1xf32>
      %357 = vector.shape_cast %356 : vector<1x1x1xf32> to vector<1x1xf32>
      %358 = vector.shape_cast %355 : vector<1x1xf32> to vector<1x1x1xf32>
      tpu.vector_store %arg4[%c0_88, %c0_89, %c0_90], %358 {strides = array<i32>} : memref<1x1x1xf32, #tpu.memory_space<vmem>>, vector<1x1x1xf32>,
      %cst_91 = arith.constant 3.906250e-03 : f32
      %359 = vector.broadcast %cst_91 : f32 to vector<1x1xf32>
      %360 = arith.mulf %315, %359 : vector<1x1xf32>
      %c0_92 = arith.constant 0 : index
      %c0_93 = arith.constant 0 : index
      %c0_94 = arith.constant 0 : index
      %361 = vector.load %arg5[%c0_92, %c0_93, %c0_94] : memref<1x1x1xf32, #tpu.memory_space<vmem>>, vector<1x1x1xf32>
      %362 = vector.shape_cast %361 : vector<1x1x1xf32> to vector<1x1xf32>
      %363 = vector.shape_cast %360 : vector<1x1xf32> to vector<1x1x1xf32>
      tpu.vector_store %arg5[%c0_92, %c0_93, %c0_94], %363 {strides = array<i32>} : memref<1x1x1xf32, #tpu.memory_space<vmem>>, vector<1x1x1xf32>,
      %cst_95 = arith.constant 6.51041686E-4 : f32
      %364 = vector.broadcast %cst_95 : f32 to vector<1x1xf32>
      %365 = arith.mulf %323, %364 : vector<1x1xf32>
      %c0_96 = arith.constant 0 : index
      %c0_97 = arith.constant 0 : index
      %c0_98 = arith.constant 0 : index
      %366 = vector.load %arg6[%c0_96, %c0_97, %c0_98] : memref<1x1x1xf32, #tpu.memory_space<vmem>>, vector<1x1x1xf32>
      %367 = vector.shape_cast %366 : vector<1x1x1xf32> to vector<1x1xf32>
      %368 = vector.shape_cast %365 : vector<1x1xf32> to vector<1x1x1xf32>
      tpu.vector_store %arg6[%c0_96, %c0_97, %c0_98], %368 {strides = array<i32>} : memref<1x1x1xf32, #tpu.memory_space<vmem>>, vector<1x1x1xf32>,
    } else {
    }
    return
  }
  func.func @transform_0(%arg0: i32, %arg1: i32) -> (i32, i32, i32, i32) {
    %c0_i32 = arith.constant 0 : i32
    %c0_i32_0 = arith.constant 0 : i32
    %c0_i32_1 = arith.constant 0 : i32
    return %arg1, %c0_i32, %arg0, %c0_i32_0 : i32, i32, i32, i32
  }
  func.func @transform_1(%arg0: i32, %arg1: i32) -> (i32, i32, i32) {
    %c0_i32 = arith.constant 0 : i32
    %c0_i32_0 = arith.constant 0 : i32
    %c0_i32_1 = arith.constant 0 : i32
    return %c0_i32, %arg0, %c0_i32_0 : i32, i32, i32
  }
  func.func @transform_2(%arg0: i32, %arg1: i32) -> (i32, i32, i32) {
    %c0_i32 = arith.constant 0 : i32
    %c0_i32_0 = arith.constant 0 : i32
    %c0_i32_1 = arith.constant 0 : i32
    return %arg1, %c0_i32, %c0_i32_0 : i32, i32, i32
  }
  func.func @transform_3(%arg0: i32, %arg1: i32) -> (i32, i32, i32) {
    %c0_i32 = arith.constant 0 : i32
    %c0_i32_0 = arith.constant 0 : i32
    %c0_i32_1 = arith.constant 0 : i32
    return %arg1, %c0_i32, %c0_i32_0 : i32, i32, i32
  }
  func.func @transform_4(%arg0: i32, %arg1: i32) -> (i32, i32, i32) {
    %c0_i32 = arith.constant 0 : i32
    %c0_i32_0 = arith.constant 0 : i32
    %c0_i32_1 = arith.constant 0 : i32
    return %arg1, %c0_i32, %c0_i32_0 : i32, i32, i32
  }
}

</mosaic_0001>

<bundles_post_ra>
// kernel: step.1
= control target key start
LH: loop header
LB: loop body
LE: loop exit
PB: predicated region body
PF: predicated region fallthrough
CT: control target
= control target key end

     0   :  { %s882_s15 = smov 0   ;;  %s884_s16 = smov 0   ;;  %s1095_s0 = inlined_call_operand.vmem [shape: f32[2,12,8,128], index: 0, kind: input, shape index: {}]   ;;  %s1096_s1 = inlined_call_operand.vmem [shape: f32[9,8,128], index: 1, kind: input, shape index: {}]   ;;  %s1097_s2 = inlined_call_operand.vmem [shape: f32[2,1,1], index: 2, kind: output, shape index: {0}]   ;;  %s1098_s3 = inlined_call_operand.vmem [shape: f32[2,1,1], index: 3, kind: output, shape index: {1}]   ;;  %s1099_s4 = inlined_call_operand.vmem [shape: f32[2,1,1], index: 4, kind: output, shape index: {2}]  }
   0x1   :  { %s886_s17 = smov 0  }
   0x2 LB: > { %s24_s18 = sadd.s32 1, %s850_s16  ;;  %p765_p0 = scmp.ge.s32.totalorder %s854_s17, 1  ;;  %s854_s17 = sphi %s886_s17, %s15_s17   ;;  %s850_s16 = sphi %s884_s16, %s1101_s16   ;;  %s846_s15 = sphi %s882_s15, %s1100_s15  }
   0x3   : > { %p25_p1 = scmp.ge.s32.totalorder %s24_s18, 2  ;;  %p193_p2 = scmp.lt.s32.totalorder %s854_s17, 3 }
   0x5   : > { %s1103_s18 = smov (%p25_p1, %s24_s18), 0  ;;  %p194_p3 = pnand %p765_p0, %p193_p2 }
   0x6   : > { %p230_p4 = scmp.lt.s32.totalorder (!%p194_p3), %s846_s15, 1 }
   0x7   : > { %197 = sbr.rel (%p194_p3) target bundleno = 450 (0x1c2), region = 28 }
   0xc   : > { %s1105_s15 = smov (!%p230_p4, %s846_s15), 1  ;;  %v393_v46 = vld [vmem:[%s1096_s1] sm:$0xff]  ;;  %v779_v47 = vld [vmem:[%s1096_s1 + $0x8] sm:$0xff]  ;;  %v780_v48 = vld [vmem:[%s1096_s1 + $0x10] sm:$0xff]  ;;  %vm591_vm2 = vcmask 0  }
   0xd   : > { %s792_s19 = smul.u32 96, %s1105_s15  ;;  %v781_v51 = vld [vmem:[%s1096_s1 + $0x18] sm:$0xff]  ;;  %v782_v52 = vld [vmem:[%s1096_s1 + $0x20] sm:$0xff]  ;;  %v783_v53 = vld [vmem:[%s1096_s1 + $0x28] sm:$0xff]  ;;  %s247_s23 = scalar_lea.vmem %s1098_s3, %s1105_s15 }
   0xe   : > { %v784_v56 = vld [vmem:[%s1096_s1 + $0x30] sm:$0xff]  ;;  %v785_v57 = vld [vmem:[%s1096_s1 + $0x38] sm:$0xff]  ;;  %s250_s27 = scalar_lea.vmem %s1099_s4, %s1105_s15  ;;  %s244_s6 = scalar_lea.vmem %s1097_s2, %s1105_s15 }
   0xf   : > { %s237_s22 = scalar_lea.vmem %s1095_s0, %s792_s19 }
  0x10   : > { %v906_v0 = vld [vmem:[%s237_s22] sm:$0xff]  ;;  %v908_v1 = vld [vmem:[%s237_s22 + $0x8] sm:$0xff]  ;;  %v910_v2 = vld [vmem:[%s237_s22 + $0x10] sm:$0xff] }
  0x11   : > { %v912_v3 = vld [vmem:[%s237_s22 + $0x18] sm:$0xff]  ;;  %v914_v4 = vld [vmem:[%s237_s22 + $0x20] sm:$0xff]  ;;  %v916_v5 = vld [vmem:[%s237_s22 + $0x28] sm:$0xff] }
  0x12   : > { %v918_v6 = vld [vmem:[%s237_s22 + $0x30] sm:$0xff]  ;;  %v920_v7 = vld [vmem:[%s237_s22 + $0x38] sm:$0xff]  ;;  %v922_v8 = vld [vmem:[%s237_s22 + $0x40] sm:$0xff] }
  0x13   : > { %v776_v9 = vld [vmem:[%s237_s22 + $0x48] sm:$0xff]  ;;  %v777_v10 = vld [vmem:[%s237_s22 + $0x50] sm:$0xff]  ;;  %v778_v11 = vld [vmem:[%s237_s22 + $0x58] sm:$0xff]  ;;  %v387_v44 = vsub.f32 %v918_v6, %v906_v0  ;;  %v388_v45 = vsub.f32 %v920_v7, %v908_v1  ;;  %v389_v50 = vsub.f32 %v922_v8, %v910_v2 }
  0x14   : > { %v297_v12 = vsub.f32 %v906_v0, %v776_v9  ;;  %v298_v13 = vsub.f32 %v908_v1, %v777_v10  ;;  %v299_v14 = vsub.f32 %v910_v2, %v778_v11  ;;  %v928_v15 = vsub.f32 %v912_v3, %v776_v9 }
  0x15   : > { %v931_v16 = vsub.f32 %v914_v4, %v777_v10  ;;  %v934_v17 = vsub.f32 %v916_v5, %v778_v11  ;;  %v937_v18 = vsub.f32 %v918_v6, %v776_v9  ;;  %v940_v19 = vsub.f32 %v920_v7, %v777_v10 }
  0x16   : > { %v943_v20 = vsub.f32 %v922_v8, %v778_v11  ;;  %v321_v21 = vmul.f32 %v297_v12, %v297_v12  ;;  %v322_v22 = vmul.f32 %v298_v13, %v298_v13  ;;  %v323_v23 = vmul.f32 %v299_v14, %v299_v14 }
  0x17   : > { %v307_v24 = vmul.f32 %v940_v19, %v934_v17  ;;  %v311_v25 = vmul.f32 %v937_v18, %v934_v17  ;;  %v315_v26 = vmul.f32 %v940_v19, %v928_v15  ;;  %v316_v27 = vmul.f32 %v937_v18, %v931_v16 }
  0x18   : > { %v306_v28 = vmul.f32 %v943_v20, %v931_v16  ;;  %v310_v29 = vmul.f32 %v943_v20, %v928_v15  ;;  %v324_v30 = vmul.f32 %v321_v21, %v321_v21  ;;  %v325_v31 = vmul.f32 %v322_v22, %v322_v22 }
  0x19   : > { %v317_v32 = vsub.f32 %v315_v26, %v316_v27  ;;  %v327_v33 = vmul.f32 %v323_v23, %v323_v23  ;;  %v390_v49 = vsub.f32 %v776_v9, %v906_v0  ;;  %v425_v54 = vmul.f32 %v393_v46, %v387_v44 }
  0x1a   : > { %v308_v34 = vsub.f32 %v306_v28, %v307_v24  ;;  %v312_v35 = vsub.f32 %v310_v29, %v311_v25  ;;  %v326_v36 = vadd.f32 %v325_v31, %v324_v30  ;;  %v430_v55 = vmul.f32 %v779_v47, %v387_v44 }
  0x1b   : > { %v318_v39 = vmul.f32 %v317_v32, %v299_v14  ;;  %v426_v58 = vmul.f32 %v781_v51, %v388_v45  ;;  %v431_v59 = vmul.f32 %v782_v52, %v388_v45  ;;  %v435_v60 = vmul.f32 %v780_v48, %v387_v44 }
  0x1c   : > { %v309_v37 = vmul.f32 %v308_v34, %v297_v12  ;;  %v313_v38 = vmul.f32 %v312_v35, %v298_v13  ;;  %v957_v40 = vadd.f32 %v327_v33, %v326_v36  ;;  %v436_v61 = vmul.f32 %v783_v53, %v388_v45  ;;  %v786_v13 = vld [vmem:[%s1096_s1 + $0x40] sm:$0xff] }
  0x1d   : > { %v391_v62 = vsub.f32 %v777_v10, %v908_v1  ;;  %v392_v63 = vsub.f32 %v778_v11, %v910_v2  ;;  %v384_v9 = vsub.f32 %v912_v3, %v906_v0  ;;  %v385_v12 = vsub.f32 %v914_v4, %v908_v1 }
  0x1e   : > { %v314_v41 = vsub.f32 %v309_v37, %v313_v38  ;;  %v427_v14 = vadd.f32 %v426_v58, %v425_v54  ;;  %v428_v21 = vmul.f32 %v784_v56, %v389_v50  ;;  %v432_v22 = vadd.f32 %v431_v59, %v430_v55 }
  0x1f   : > { %v433_v23 = vmul.f32 %v785_v57, %v389_v50  ;;  %v440_v24 = vmul.f32 %v393_v46, %v390_v49  ;;  %v410_v25 = vmul.f32 %v393_v46, %v384_v9  ;;  %v411_v26 = vmul.f32 %v781_v51, %v385_v12 }
  0x20   : > { %v319_v42 = vadd.f32 %v318_v39, %v314_v41  ;;  %v437_v10 = vadd.f32 %v436_v61, %v435_v60  ;;  %v438_v27 = vmul.f32 %v786_v13, %v389_v50  ;;  %v386_v11 = vsub.f32 %v916_v5, %v910_v2 }
  0x21   : > { %v415_v28 = vmul.f32 %v779_v47, %v384_v9  ;;  %v416_v29 = vmul.f32 %v782_v52, %v385_v12  ;;  %v429_v30 = vadd.f32 %v428_v21, %v427_v14  ;;  %v1004_v31 = vadd.f32 %v433_v23, %v432_v22 }
  0x22   : > { %v959_v43 = vmul.f32 -0.16666667, %v319_v42  ;;  %v441_v32 = vmul.f32 %v781_v51, %v391_v62  ;;  %v443_v33 = vmul.f32 %v784_v56, %v392_v63  ;;  %v420_v34 = vmul.f32 %v780_v48, %v384_v9 }
  0x23   : > { %v421_v35 = vmul.f32 %v783_v53, %v385_v12  ;;  %v445_v36 = vmul.f32 %v779_v47, %v390_v49  ;;  %v446_v37 = vmul.f32 %v782_v52, %v391_v62  ;;  %v412_v38 = vadd.f32 %v411_v26, %v410_v25 }
  0x24   : > { %524 = vadd.xlane.f32.xlu0 %v959_v43  ;;  %v1006_v39 = vadd.f32 %v438_v27, %v437_v10  ;;  %v442_v41 = vadd.f32 %v441_v32, %v440_v24  ;;  %v448_v42 = vmul.f32 %v785_v57, %v392_v63  ;;  %v450_v45 = vmul.f32 %v780_v48, %v390_v49 }
  0x25   : > { %v447_v44 = vadd.f32 %v446_v37, %v445_v36  ;;  %v451_v46 = vmul.f32 %v783_v53, %v391_v62  ;;  %v453_v50 = vmul.f32 %v786_v13, %v392_v63  ;;  %v413_v54 = vmul.f32 %v784_v56, %v386_v11 }
  0x26   : > { %v417_v55 = vadd.f32 %v416_v29, %v415_v28  ;;  %v418_v58 = vmul.f32 %v785_v57, %v386_v11  ;;  %v1008_v59 = vadd.f32 %v443_v33, %v442_v41  ;;  %v422_v51 = vadd.f32 %v421_v35, %v420_v34 }
  0x27   : > { %v423_v60 = vmul.f32 %v786_v13, %v386_v11  ;;  %v1010_v61 = vadd.f32 %v448_v42, %v447_v44  ;;  %v452_v47 = vadd.f32 %v451_v46, %v450_v45  ;;  %v414_v56 = vadd.f32 %v413_v54, %v412_v38 }
  0x28   : > { %v484_v52 = vmul.f32 %v1008_v59, %v1004_v31  ;;  %v479_v49 = vmul.f32 %v1008_v59, %v1006_v39  ;;  %v419_v57 = vadd.f32 %v418_v58, %v417_v55  ;;  %v329_v34 = vmul.f32 %v928_v15, %v928_v15 }
  0x29   : > { %v1014_v9 = vadd.f32 %v453_v50, %v452_v47  ;;  %v475_v48 = vmul.f32 %v1010_v61, %v1006_v39  ;;  %v483_v53 = vmul.f32 %v1010_v61, %v429_v30  ;;  %v424_v62 = vadd.f32 %v423_v60, %v422_v51 }
  0x2a   : > { %v455_v28 = vmul.f32 %v414_v56, %v414_v56  ;;  %v457_v29 = vmul.f32 %v419_v57, %v419_v57  ;;  %v330_v35 = vmul.f32 %v931_v16, %v931_v16  ;;  %v461_v37 = vmul.f32 %v429_v30, %v429_v30 }
  0x2b   : > { %v474_v63 = vmul.f32 %v1014_v9, %v1004_v31  ;;  %v478_v12 = vmul.f32 %v1014_v9, %v429_v30  ;;  %v485_v13 = vsub.f32 %v483_v53, %v484_v52  ;;  %v459_v33 = vmul.f32 %v424_v62, %v424_v62 }
  0x2c   : > { %v458_v32 = vadd.f32 %v457_v29, %v455_v28  ;;  %v331_v38 = vmul.f32 %v934_v17, %v934_v17  ;;  %v332_v41 = vmul.f32 %v329_v34, %v329_v34  ;;  %v333_v42 = vmul.f32 %v330_v35, %v330_v35 }
  0x2d   : > { %v476_v14 = vsub.f32 %v474_v63, %v475_v48  ;;  %v480_v21 = vsub.f32 %v478_v12, %v479_v49  ;;  %v486_v24 = vmul.f32 %v485_v13, %v424_v62  ;;  %v338_v44 = vmul.f32 %v937_v18, %v937_v18 }
  0x2e   : > { %v460_v36 = vadd.f32 %v459_v33, %v458_v32  ;;  %v339_v45 = vmul.f32 %v940_v19, %v940_v19  ;;  %v347_v46 = vsub.f32 %v906_v0, %v912_v3  ;;  %v348_v15 = vsub.f32 %v908_v1, %v914_v4 }
  0x2f   : > { %v477_v22 = vmul.f32 %v476_v14, %v414_v56  ;;  %v481_v23 = vmul.f32 %v480_v21, %v419_v57  ;;  %v334_v50 = vadd.f32 %v333_v42, %v332_v41  ;;  %v335_v30 = vmul.f32 %v331_v38, %v331_v38 }
  0x30   : > { %v462_v16 = vadd.f32 %v461_v37, %v460_v36  ;;  %v340_v17 = vmul.f32 %v943_v20, %v943_v20  ;;  %v341_v54 = vmul.f32 %v338_v44, %v338_v44  ;;  %v342_v55 = vmul.f32 %v339_v45, %v339_v45 }
  0x31   : > { %v482_v25 = vsub.f32 %v477_v22, %v481_v23  ;;  %v349_v18 = vsub.f32 %v910_v2, %v916_v5  ;;  %v350_v58 = vmul.f32 %v347_v46, %v347_v46  ;;  %v351_v51 = vmul.f32 %v348_v15, %v348_v15 }
  0x32   : > { %v336_v19 = vadd.f32 %v335_v30, %v334_v50  ;;  %v344_v60 = vmul.f32 %v340_v17, %v340_v17  ;;  %v359_v47 = vsub.f32 %v906_v0, %v918_v6  ;;  %v360_v52 = vsub.f32 %v908_v1, %v920_v7 }
  0x33   : > { %v487_v26 = vadd.f32 %v486_v24, %v482_v25  ;;  %v343_v48 = vadd.f32 %v342_v55, %v341_v54  ;;  %v352_v49 = vmul.f32 %v349_v18, %v349_v18  ;;  %v353_v53 = vmul.f32 %v350_v58, %v350_v58 }
  0x34   : > { %v354_v56 = vmul.f32 %v351_v51, %v351_v51  ;;  %v337_v20 = vadd.f32 %v336_v19, %v957_v40  ;;  %v361_v57 = vsub.f32 %v910_v2, %v922_v8  ;;  %v362_v62 = vmul.f32 %v359_v47, %v359_v47 }
  0x35   : > { %v1024_v10 = vmul.f32 8000.0, %v487_v26  ;;  %v363_v63 = vmul.f32 %v360_v52, %v360_v52  ;;  %v345_v12 = vadd.f32 %v344_v60, %v343_v48  ;;  %v356_v14 = vmul.f32 %v352_v49, %v352_v49 }
  0x36   : > { %v355_v13 = vadd.f32 %v354_v56, %v353_v53  ;;  %v371_v0 = vsub.f32 %v912_v3, %v918_v6  ;;  %v364_v21 = vmul.f32 %v361_v57, %v361_v57  ;;  %v365_v22 = vmul.f32 %v362_v62, %v362_v62 }
  0x37   : > { %v492_v27 = vmul.f32 %v1024_v10, %v1024_v10  ;;  %v366_v1 = vmul.f32 %v363_v63, %v363_v63  ;;  %v372_v23 = vsub.f32 %v914_v4, %v920_v7  ;;  %v346_v24 = vadd.f32 %v345_v12, %v337_v20 }
  0x38   : > { %v357_v25 = vadd.f32 %v356_v14, %v355_v13  ;;  %v373_v40 = vsub.f32 %v916_v5, %v922_v8  ;;  %v374_v2 = vmul.f32 %v371_v0, %v371_v0  ;;  %v463_v29 = vmul.f32 %v1004_v31, %v1004_v31 }
  0x39   : > { %v493_v11 = vadd.f32 1e-10, %v492_v27  ;;  %v367_v27 = vadd.f32 %v366_v1, %v365_v22  ;;  %v375_v28 = vmul.f32 %v372_v23, %v372_v23  ;;  %v465_v33 = vmul.f32 %v1006_v39, %v1006_v39 }
  0x3a   : > { %v358_v3 = vadd.f32 %v357_v25, %v346_v24  ;;  %v376_v6 = vmul.f32 %v373_v40, %v373_v40  ;;  %v377_v32 = vmul.f32 %v374_v2, %v374_v2  ;;  %v464_v34 = vadd.f32 %v463_v29, %v462_v16 }
  0x3b   : > { %828 = vlog2.f32 %v493_v11  ;;  %v368_v11 = vmul.f32 %v364_v21, %v364_v21  ;;  %v378_v7 = vmul.f32 %v375_v28, %v375_v28  ;;  %v467_v5 = vmul.f32 %v1008_v59, %v1008_v59 }
  0x3c   : > { %v380_v35 = vmul.f32 %v376_v6, %v376_v6  ;;  %v466_v38 = vadd.f32 %v465_v33, %v464_v34  ;;  %v469_v44 = vmul.f32 %v1010_v61, %v1010_v61  ;;  %v471_v16 = vmul.f32 %v1014_v9, %v1014_v9 }
  0x3d   : > { %v369_v4 = vadd.f32 %v368_v11, %v367_v27  ;;  %v379_v37 = vadd.f32 %v378_v7, %v377_v32  ;;  %v856_v50 = vmov 0.0   ;;  %vm489_vm0 = vcmp.ge.f32.partialorder %v1024_v10, 0.0 }
  0x3e   : > { %v468_v31 = vadd.f32 %v467_v5, %v466_v38  ;;  %v787_v54 = vsel %vm489_vm0, 1.0, %v856_v50  ;;  %v572_v9 = vlaneseq }
  0x3f   : > { %v370_v36 = vadd.f32 %v369_v4, %v358_v3  ;;  %v381_v42 = vadd.f32 %v380_v35, %v379_v37 }
  0x40   : > { %v470_v15 = vadd.f32 %v469_v44, %v468_v31  ;;  %v573_v48 = vshrl.u32 %v572_v9, 7  ;;  %v576_v53 = vand.u32 127, %v572_v9 }
  0x41   : > { %v382_v46 = vadd.f32 %v381_v42, %v370_v36 }
  0x42   : > { %v472_v59 = vadd.f32 %v471_v16, %v470_v15  ;;  %v574_v49 = vmul.u32 128, %v573_v48 }
  0x43   : > { %v383_v39 = vmul.f32 160000.0, %v382_v46 }
  0x44   : > { %v473_v30 = vmul.f32 400.0, %v472_v59  ;;  %v577_v20 = vadd.s32 %v576_v53, %v574_v49 }
  0x45   : > { %546 = vadd.xlane.f32.xlu1 %v383_v39 }
  0x46   : > { %vm578_vm1 = vcmp.lt.s32.totalorder %v577_v20, 256 }
  0x48   : > { %v829_v26 = vpop.eup %828 }
  0x49   : > { %v495_v8 = vmul.f32 0.6931472, %v829_v26  ;;  %557 = vadd.xlane.f32.xlu1 %v856_v50 }
  0x4b   : > { %v496_v41 = vmul.f32 -0.33333334, %v495_v8 }
  0x4d   : > { %v497_v45 = vmul.f32 1.442695, %v496_v41 }
  0x4f   : > { %830 = vpow2.f32 %v497_v45 }
  0x5c   : > { %v831_v17 = vpop.eup %830 }
  0x5d   : > { %v499_v55 = vmul.f32 %v831_v17, %v473_v30 }
  0x5f   : > { %v500_v18 = vmul.f32 %v787_v54, %v499_v55 }
  0x61   : > { %535 = vadd.xlane.f32.xlu0 %v500_v18 }
  0xad   : > { %v525_v61 = vpop.xlane.xlu0 %524 }
  0xae   : > { %v526_v58 = vrot.slane %v525_v61, 4 }
  0xb0   : > { %v527_v51 = vadd.f32 %v526_v58, %v525_v61 }
  0xb2   : > { %v528_v19 = vrot.slane %v527_v51, 2 }
  0xb4   : > { %v529_v60 = vadd.f32 %v528_v19, %v527_v51 }
  0xb6   : > { %v530_v47 = vrot.slane %v529_v60, 1 }
  0xb8   : > { %v531_v52 = vadd.f32 %v530_v47, %v529_v60 }
  0xba   : > { %793 = vpush %v531_v52 }
  0xce   : > { %v547_v13 = vpop.xlane.xlu1 %546 }
  0xcf   : > { %v548_v0 = vrot.slane %v547_v13, 4 }
  0xd1   : > { %v549_v22 = vadd.f32 %v548_v0, %v547_v13 }
  0xd2   : > { %v558_v14 = vpop.xlane.xlu1 %557 }
  0xd3   : > { %v559_v21 = vrot.slane %v558_v14, 4  ;;  %v550_v23 = vrot.slane %v549_v22, 2 }
  0xd5   : > { %v560_v1 = vadd.f32 %v559_v21, %v558_v14  ;;  %v551_v2 = vadd.f32 %v550_v23, %v549_v22 }
  0xd7   : > { %v561_v24 = vrot.slane %v560_v1, 2  ;;  %v552_v11 = vrot.slane %v551_v2, 1 }
  0xd9   : > { %v562_v27 = vadd.f32 %v561_v24, %v560_v1  ;;  %v553_v6 = vadd.f32 %v552_v11, %v551_v2 }
  0xdb   : > { %v563_v29 = vrot.slane %v562_v27, 1 }
  0xdd   : > { %v564_v33 = vadd.f32 %v563_v29, %v562_v27 }
  0xea   : > { %v536_v25 = vpop.xlane.xlu0 %535 }
  0xeb   : > { %s794_s19 = spop %793  ;;  %v537_v40 = vrot.slane %v536_v25, 4 }
  0xec   : > { %v533_v56 = vstv %s794_s19 }
  0xed   : > { %v556_v10 = vmul.f32 0.00390625, %v533_v56  ;;  %v538_v26 = vadd.f32 %v537_v40, %v536_v25 }
  0xef   : > { %v569_v57 = vsub.f32 %v959_v43, %v556_v10  ;;  %v539_v43 = vrot.slane %v538_v26, 2 }
  0xf1   : > { %v570_v62 = vmul.f32 %v569_v57, %v569_v57  ;;  %v540_v28 = vadd.f32 %v539_v43, %v538_v26 }
  0xf3   : > { %v571_v63 = vmul.f32 %v570_v62, %v570_v62  ;;  %v541_v3 = vrot.slane %v540_v28, 1 }
  0xf5   : > { %v579_v12 = vsel %vm578_vm1, %v571_v63, 0.0  ;;  %v542_v32 = vadd.f32 %v541_v3, %v540_v28 }
  0xf6   : > { %580 = vadd.xlane.f32.xlu0 %v579_v12 }
  0xf7   : > { %795 = vpush %v542_v32 }
  0xf8   : > { %797 = vpush %v553_v6 }
  0xf9   : > { %799 = vpush %v564_v33 }
 0x128   : > { %s796_s20 = spop %795 }
 0x129   : > { %v544_v4 = vstv %s796_s20  ;;  %s798_s24 = spop %797 }
 0x12a   : > { %v593_v7 = vmul.f32 0.00390625, %v544_v4  ;;  %v555_v34 = vstv %s798_s24  ;;  %s800_s28 = spop %799 }
 0x12b   : > { %v595_v35 = vmul.f32 0.0006510417, %v555_v34  ;;  %v566_v31 = vstv %s800_s28 }
 0x12c   : > { %594 = vst.msk [vmem:[%s247_s23] sm:$0x1] %vm591_vm2, %v593_v7 }
 0x12d   : > { %596 = vst.msk [vmem:[%s250_s27] sm:$0x1] %vm591_vm2, %v595_v35 }
 0x17f   : > { %v581_v5 = vpop.xlane.xlu0 %580 }
 0x180   : > { %v582_v8 = vrot.slane %v581_v5, 4 }
 0x182   : > { %v583_v36 = vadd.f32 %v582_v8, %v581_v5 }
 0x184   : > { %v584_v37 = vrot.slane %v583_v36, 2 }
 0x186   : > { %v585_v38 = vadd.f32 %v584_v37, %v583_v36 }
 0x188   : > { %v586_v41 = vrot.slane %v585_v38, 1 }
 0x18a   : > { %v587_v42 = vadd.f32 %v586_v41, %v585_v38 }
 0x18c   : > { %801 = vpush %v587_v42 }
 0x1bd   : > { %s802_s29 = spop %801 }
 0x1be   : > { %v589_v44 = vstv %s802_s29 }
 0x1bf   : > { %v590_v45 = vadd.f32 %v589_v44, %v566_v31 }
 0x1c1   : > { %592 = vst.msk [vmem:[%s244_s6] sm:$0x1] %vm591_vm2, %v590_v45 }
 0x1c2 PF: > { %s15_s17 = sadd.s32 1, %s854_s17   ;;  %s1100_s15 = smov %s850_s16 }
 0x1c3   : > { %p12_p5 = scmp.ge.s32.totalorder %s15_s17, 4   ;;  %s1101_s16 = smov %s1103_s18 }
 0x1c5   :  { %14 = sbr.rel (!%p12_p5) target bundleno = 2 (0x2), region = 120 }

</bundles_post_ra>
